<compile_context>
chip_gen: v7x
topology: tpu7x:2x2x1
jax: 0.10.0
libtpu: 0.0.40
codegen_flags: <defaults>
</compile_context>

<pallas_src>
import functools
from collections import OrderedDict

import jax
import jax.numpy as jnp
from jax import lax
from jax.experimental import pallas as pl
from jax.experimental.pallas import tpu as pltpu

_LANE = 128


# ----------------------------------------------------------------------------
# Hardware-aware budgets / tiling helpers
# ----------------------------------------------------------------------------

def _round_up(x, m):
    return -(-x // m) * m


def _vmem_budget_bytes():
    """Generation-aware VMEM budget: ~75% of physical.

    ~48 MiB on v7x (64 MiB/TC), ~96 MiB on v5e/v6e (128 MiB). Falls back to a
    conservative v7x-sized budget if the query is unavailable.
    """
    cap = 64 * 1024 * 1024
    try:
        info = pltpu.get_tpu_info()
        c = getattr(info, "vmem_capacity_bytes", None)
        if isinstance(c, (int, float)) and c > 0:
            cap = int(c)
    except Exception:
        pass
    return (cap * 3) // 4


def _pick_hw_tile(hw_pad, per_col_bytes, vmem_budget):
    """Largest 128-multiple tile dividing hw_pad with ~1-4 MiB per buffer.

    `per_col_bytes` = bytes DMA'd per spatial column per pipeline buffer
    (inputs + any tiled outputs).  Double-buffering + headroom stays inside
    `vmem_budget`.
    """
    target = min(4 << 20, max(1 << 20, vmem_budget // 8))
    t_cap = max(_LANE, (target // max(per_col_bytes, 1)) // _LANE * _LANE)
    if hw_pad <= t_cap:
        return hw_pad
    t = (min(hw_pad, t_cap) // _LANE) * _LANE
    while t >= _LANE:
        if hw_pad % t == 0:
            return t
        t -= _LANE
    return _LANE


def _to_lane_padded(x_nchw):
    """(N,C,H,W) -> (N,C,HW_pad). Free reshape; pads only when HW % 128 != 0."""
    N, C, H, W = x_nchw.shape
    hw = H * W
    x3 = x_nchw.reshape(N, C, hw)
    hw_pad = _round_up(hw, _LANE)
    if hw_pad != hw:
        # TODO(synk): non-128-multiple spatial sizes pay one zero-pad copy.
        x3 = jnp.pad(x3, ((0, 0), (0, 0), (0, hw_pad - hw)))
    return x3, hw, hw_pad


# ----------------------------------------------------------------------------
# Pallas kernels
# ----------------------------------------------------------------------------

def _conv_kernel(x_ref, w_ref, b_ref, o_ref):
    """1x1 conv for one (image, spatial tile): (Cout,Cin) @ (Cin,T) + bias."""
    feat = jnp.dot(w_ref[...], x_ref[0], preferred_element_type=jnp.float32)
    o_ref[0] = (feat + b_ref[...]).astype(o_ref.dtype)


def _fused_loss_kernel(x_ref, w_ref, b_ref, loss_ref, *, hw_valid, tile, inv_n):
    """Fused 1x1 conv + masked sum(feat^2), accumulated per image.

    grid = (N, HW_pad // T).  loss_ref is the (1,1,1) per-image partial block;
    its BlockSpec index depends only on the image index, so it stays resident
    across the spatial ('arbitrary') axis and acts as the accumulator.  No
    feature tensor is written to HBM.
    """
    j = pl.program_id(1)

    @pl.when(j == 0)
    def _():
        loss_ref[...] = jnp.zeros_like(loss_ref)

    feat = jnp.dot(w_ref[...], x_ref[0], preferred_element_type=jnp.float32)
    feat = feat + b_ref[...]                                   # (Cout, T)
    # Zero-padded spatial columns produce feat == bias there; mask them out.
    col = j * tile + lax.broadcasted_iota(jnp.int32, (1, tile), 1)
    sq = jnp.where(col < hw_valid, feat * feat, 0.0)
    loss_ref[...] += jnp.sum(sq) * inv_n


def _mean_kernel(x_ref, o_ref, acc_ref, *, valid_rows, tr, inv_n):
    """Chunked mean: accumulate lane-dense blocks (ragged tail masked),
    single cross-lane reduce on the last grid step."""
    i = pl.program_id(0)

    @pl.when(i == 0)
    def _():
        acc_ref[...] = jnp.zeros_like(acc_ref)

    v = x_ref[...].astype(jnp.float32)
    row = i * tr + lax.broadcasted_iota(jnp.int32, v.shape, 0)
    acc_ref[...] += jnp.where(row < valid_rows, v, 0.0)

    @pl.when(i == pl.num_programs(0) - 1)
    def _():
        o_ref[0, 0] = jnp.sum(acc_ref[...]) * inv_n


# ----------------------------------------------------------------------------
# Wrappers around pallas_call
# ----------------------------------------------------------------------------

def pointwise_conv_nchw(x_nchw, w_oc, b):
    """1x1 conv, NCHW in / NCHW out, no transposes.

    x: (N, Cin, H, W) f32; w_oc: (Cout, Cin); b: (Cout, 1).
    """
    N, C, H, W = x_nchw.shape
    Cout = w_oc.shape[0]
    x3, hw, hw_pad = _to_lane_padded(x_nchw)
    budget = _vmem_budget_bytes()
    T = _pick_hw_tile(hw_pad, (C + Cout) * 4, budget)

    out3 = pl.pallas_call(
        _conv_kernel,
        out_shape=jax.ShapeDtypeStruct((N, Cout, hw_pad), jnp.float32),
        grid=(N, hw_pad // T),
        in_specs=[
            pl.BlockSpec((1, C, T), lambda n, j: (n, 0, j)),
            pl.BlockSpec((Cout, C), lambda n, j: (0, 0)),
            pl.BlockSpec((Cout, 1), lambda n, j: (0, 0)),
        ],
        out_specs=pl.BlockSpec((1, Cout, T), lambda n, j: (n, 0, j)),
        compiler_params=pltpu.CompilerParams(
            dimension_semantics=("parallel", "parallel"),
            vmem_limit_bytes=budget),
    )(x3, w_oc, b)
    if hw_pad != hw:
        out3 = out3[:, :, :hw]
    return out3.reshape(N, Cout, H, W)


def fused_conv_square_mean(x_nchw, w_oc, b):
    """Fused 1x1 conv + mean(feat**2) without materializing features in HBM.

    Emits per-image partial losses (batch axis 'parallel' -> both v7x cores);
    the tiny cross-image sum happens in plain JAX.  Returns a scalar f32.
    """
    N, C, H, W = x_nchw.shape
    Cout = w_oc.shape[0]
    x3, hw, hw_pad = _to_lane_padded(x_nchw)
    budget = _vmem_budget_bytes()
    T = _pick_hw_tile(hw_pad, C * 4, budget)
    inv_n = 1.0 / float(N * Cout * hw)

    partials = pl.pallas_call(
        functools.partial(_fused_loss_kernel, hw_valid=hw, tile=T, inv_n=inv_n),
        out_shape=jax.ShapeDtypeStruct((N, 1, 1), jnp.float32),
        grid=(N, hw_pad // T),
        in_specs=[
            pl.BlockSpec((1, C, T), lambda n, j: (n, 0, j)),
            pl.BlockSpec((Cout, C), lambda n, j: (0, 0)),
            pl.BlockSpec((Cout, 1), lambda n, j: (0, 0)),
        ],
        out_specs=pl.BlockSpec((1, 1, 1), lambda n, j: (n, 0, 0)),
        compiler_params=pltpu.CompilerParams(
            dimension_semantics=("parallel", "arbitrary"),
            vmem_limit_bytes=budget),
    )(x3, w_oc, b)
    return jnp.sum(partials)


def pallas_mean(x):
    """Scalar mean of an arbitrary tensor (== torch.Tensor.mean())."""
    n = int(x.size)
    xf = jnp.ravel(x)
    if n == 1:
        return xf[0].astype(jnp.float32)

    if n % _LANE == 0:
        x2 = xf.reshape(n // _LANE, _LANE)        # free reshape, no copy
    elif n <= (1 << 16):
        x2 = xf.reshape(1, n)                     # small ragged: one full-extent block
    else:
        # TODO(synk): large tensors with size % 128 != 0 pay one pad copy.
        x2 = jnp.pad(xf, (0, _LANE - n % _LANE)).reshape(-1, _LANE)

    rows, cols = x2.shape
    TR_MAX = 2048                                 # (2048,128) f32 block = 1 MiB
    tr = rows if rows <= TR_MAX else TR_MAX
    grid = pl.cdiv(rows, tr)

    out = pl.pallas_call(
        functools.partial(_mean_kernel, valid_rows=rows, tr=tr,
                          inv_n=1.0 / float(n)),
        out_shape=jax.ShapeDtypeStruct((1, 1), jnp.float32),
        grid=(grid,),
        in_specs=[pl.BlockSpec((tr, cols), lambda i: (i, 0))],
        out_specs=pl.BlockSpec((1, 1), lambda i: (0, 0)),
        scratch_shapes=[pltpu.VMEM((tr, cols), jnp.float32)],
        compiler_params=pltpu.CompilerParams(
            dimension_semantics=("arbitrary",),
            vmem_limit_bytes=_vmem_budget_bytes()),
    )(x2)
    return out[0, 0]


# ----------------------------------------------------------------------------
# BaseModel (JAX port of the PyTorch abstract base class)
# ----------------------------------------------------------------------------

class BaseModel:
    """Base class for cls/seg/det model (JAX/Pallas port)."""

    def __init__(self):
        self.fp16_enabled = False  # auto_fp16 is a no-op when disabled

    @property
    def with_neck(self):
        return hasattr(self, 'neck') and self.neck is not None

    @property
    def with_head(self):
        return hasattr(self, 'head') and self.head is not None

    # ----- abstract in the original; concrete subclass must override -----
    def extract_feat(self, imgs):
        raise NotImplementedError

    def forward_train(self, imgs, img_metas, **kwargs):
        raise NotImplementedError

    def extract_feats(self, imgs):
        assert isinstance(imgs, list)
        return [self.extract_feat(img) for img in imgs]

    def simple_test(self, img, img_metas, **kwargs):
        raise NotImplementedError

    def aug_test(self, imgs, img_metas, **kwargs):
        raise NotImplementedError

    def init_weights(self, pretrained=None):
        # TODO(synk): pretrained checkpoint loading / logger not ported.
        pass

    def forward_test(self, imgs, img_metas, **kwargs):
        for var, name in [(imgs, 'imgs'), (img_metas, 'img_metas')]:
            if not isinstance(var, list):
                raise TypeError(f'{name} must be a list, but got {type(var)}')
        num_augs = len(imgs)
        if num_augs != len(img_metas):
            raise ValueError(
                f'num of augmentations ({len(imgs)}) != '
                f'num of image meta ({len(img_metas)})')
        samples_per_gpu = imgs[0].shape[0]
        assert samples_per_gpu == 1
        if num_augs == 1:
            if 'proposals' in kwargs:
                kwargs['proposals'] = kwargs['proposals'][0]
            return self.simple_test(imgs[0], img_metas[0], **kwargs)
        else:
            assert 'proposals' not in kwargs
            return self.aug_test(imgs, img_metas, **kwargs)

    # @auto_fp16(apply_to=('img',)) -- no-op, self.fp16_enabled is False
    def forward(self, img, img_metas=None, return_loss=True, **kwargs):
        if return_loss:
            return self.forward_train(img, img_metas, **kwargs)
        else:
            return self.forward_test(img, img_metas, **kwargs)

    def __call__(self, **data):
        return self.forward(**data)

    def _parse_losses(self, losses):
        log_vars = OrderedDict()
        for loss_name, loss_value in losses.items():
            if loss_name in ['prediction']:
                log_vars[loss_name] = loss_value
            elif isinstance(loss_value, jnp.ndarray):
                log_vars[loss_name] = pallas_mean(loss_value)
            elif isinstance(loss_value, list):
                log_vars[loss_name] = sum(pallas_mean(_l) for _l in loss_value)
            elif isinstance(loss_value, float):
                log_vars[loss_name] = loss_value
            else:
                raise TypeError(
                    f'{loss_name} is not a tensor or list of tensors')
        loss = sum(_value for _key, _value in log_vars.items()
                   if 'loss' in _key.lower())
        log_vars['total_loss'] = loss
        # Single host transfer for logging instead of a blocking .item() per
        # entry (avoids serializing kernel launches on device->host syncs).
        scalar_entries = {k: v for k, v in log_vars.items()
                          if isinstance(v, jnp.ndarray) and v.size == 1}
        host_vals = jax.device_get(scalar_entries)
        for k, v in host_vals.items():
            log_vars[k] = float(v)
        # TODO(synk): non-scalar 'prediction' entries stay as device arrays
        # (the original .item() would raise on them anyway).
        return loss, log_vars

    def train_step(self, data, optimizer):
        losses = self(**data)
        loss, log_vars = self._parse_losses(losses)
        outputs = dict(loss=loss, log_vars=log_vars,
                       num_samples=len(data['img_metas']))
        return outputs

    def val_step(self, data, optimizer):
        losses = self(**data)
        loss, log_vars = self._parse_losses(losses)
        outputs = dict(loss=loss, log_vars=log_vars,
                       num_samples=len(data['img_metas']))
        return outputs


# ----------------------------------------------------------------------------
# Minimal deterministic concrete model (fills the abstract methods)
# ----------------------------------------------------------------------------

class SimplePointwiseModel(BaseModel):
    """Concrete model: 1x1-conv backbone + squared-feature training loss."""

    def __init__(self, in_channels, out_channels, key):
        super().__init__()
        kw, kb = jax.random.split(key)
        # weight stored as (Cout, Cin) so the conv is (Cout,Cin)@(Cin,H*W)
        self.weight = (jax.random.normal(kw, (out_channels, in_channels),
                                         jnp.float32) * 0.1)
        self.bias = (jax.random.normal(kb, (out_channels, 1),
                                       jnp.float32) * 0.01)

    def extract_feat(self, imgs):
        # imgs: (N, Cin, H, W) -> features (N, Cout, H, W)
        return pointwise_conv_nchw(imgs, self.weight, self.bias)

    def forward_train(self, imgs, img_metas, **kwargs):
        # Fused conv + square + mean; no feature tensor ever hits HBM.
        # Numerically identical to mean(square(extract_feat(imgs))).
        loss_scalar = fused_conv_square_mean(imgs, self.weight, self.bias)
        return dict(loss_feat=loss_scalar)


# ----------------------------------------------------------------------------
# Demo
# ----------------------------------------------------------------------------

if __name__ == "__main__":
    key = jax.random.PRNGKey(0)
    k_img, k_model, k_odd, k_mean1, k_mean2 = jax.random.split(key, 5)

    N, C, H, W = 2, 4, 16, 16
    C_OUT = 8

    img = jax.random.normal(k_img, (N, C, H, W), dtype=jnp.float32)
    img_metas = [dict(img_shape=(H, W, C), scale_factor=1.0, flip=False)
                 for _ in range(N)]

    model = SimplePointwiseModel(in_channels=C, out_channels=C_OUT, key=k_model)
    model.init_weights()

    def ref_feat(x):
        return (jnp.einsum('oc,nchw->nohw', model.weight, x)
                + model.bias.reshape(1, C_OUT, 1, 1))

    # pure-JAX reference for correctness
    feat_ref = ref_feat(img)
    loss_ref = jnp.mean(feat_ref * feat_ref)

    # conv-only kernel (extract_feat path)
    feat_pl = model.extract_feat(img)

    # fused training path (no feature write)
    data = dict(img=img, img_metas=img_metas, return_loss=True)
    outputs = model.train_step(data, optimizer=None)
    jax.block_until_ready(outputs['loss'])
    jax.block_until_ready(feat_pl)

    assert jnp.allclose(feat_pl, feat_ref, atol=1e-5, rtol=1e-5)
    assert abs(float(outputs['loss']) - float(loss_ref)) < 1e-5

    # odd spatial size (H*W not a multiple of 128) -> exercises pad+mask path
    img_odd = jax.random.normal(k_odd, (N, C, 6, 7), dtype=jnp.float32)
    feat_odd_ref = ref_feat(img_odd)
    loss_odd_ref = jnp.mean(feat_odd_ref * feat_odd_ref)
    feat_odd_pl = model.extract_feat(img_odd)
    loss_odd_pl = fused_conv_square_mean(img_odd, model.weight, model.bias)
    jax.block_until_ready(loss_odd_pl)
    assert jnp.allclose(feat_odd_pl, feat_odd_ref, atol=1e-5, rtol=1e-5)
    assert abs(float(loss_odd_pl) - float(loss_odd_ref)) < 1e-5

    # generic chunked pallas_mean: small ragged + multi-block with masked tail
    t_small = jax.random.normal(k_mean1, (3, 5, 7), jnp.float32)
    assert abs(float(pallas_mean(t_small)) - float(jnp.mean(t_small))) < 1e-5
    t_big = jax.random.normal(k_mean2, (2500, 128), jnp.float32)
    assert abs(float(pallas_mean(t_big)) - float(jnp.mean(t_big))) < 2e-4

    assert outputs['num_samples'] == N
    assert 'total_loss' in outputs['log_vars']
    print("KERNEL_OK")
</pallas_src>

<mosaic_0001>
module attributes {stable_mosaic.version = 11 : i64} {
  func.func @_conv_kernel(%arg0: i32, %arg1: i32, %arg2: memref<1x4x256xf32, #tpu.memory_space<vmem>>, %arg3: memref<8x4xf32, #tpu.memory_space<vmem>>, %arg4: memref<8x1xf32, #tpu.memory_space<vmem>>, %arg5: memref<1x8x256xf32, #tpu.memory_space<vmem>>) attributes {dimension_semantics = [#tpu.dimension_semantics<parallel>, #tpu.dimension_semantics<parallel>], iteration_bounds = array<i64: 2, 1>, scalar_prefetch = 0 : i64, scratch_operands = 0 : i64, tpu.core_type = #tpu.core_type<tc>, window_params = [{transform_indices = @transform_0, window_bounds = array<i64: 1, 4, 256>}, {pipeline_mode = #tpu.pipeline_mode<synchronous>, transform_indices = @transform_1, window_bounds = array<i64: 8, 4>}, {pipeline_mode = #tpu.pipeline_mode<synchronous>, transform_indices = @transform_2, window_bounds = array<i64: 8, 1>}, {transform_indices = @transform_3, window_bounds = array<i64: 1, 8, 256>}]} {
    %c0 = arith.constant 0 : index
    %c0_0 = arith.constant 0 : index
    %0 = vector.load %arg3[%c0, %c0_0] : memref<8x4xf32, #tpu.memory_space<vmem>>, vector<8x4xf32>
    %c0_1 = arith.constant 0 : index
    %c0_2 = arith.constant 0 : index
    %c0_3 = arith.constant 0 : index
    %1 = vector.load %arg2[%c0_1, %c0_2, %c0_3] : memref<1x4x256xf32, #tpu.memory_space<vmem>>, vector<1x4x256xf32>
    %2 = vector.shape_cast %1 : vector<1x4x256xf32> to vector<4x256xf32>
    %cst = arith.constant dense<0.000000e+00> : vector<8x256xf32>
    %3 = tpu.matmul %0, %2, %cst {dimension_numbers = #tpu.dot_dimension_numbers<[1], [0], [0], [1], [0, 0, 1, 1], [], []>} : vector<8x4xf32>, vector<4x256xf32>, vector<8x256xf32> -> vector<8x256xf32>
    %c0_4 = arith.constant 0 : index
    %c0_5 = arith.constant 0 : index
    %4 = vector.load %arg4[%c0_4, %c0_5] : memref<8x1xf32, #tpu.memory_space<vmem>>, vector<8x1xf32>
    %5 = vector.broadcast %4 : vector<8x1xf32> to vector<8x256xf32>
    %6 = arith.addf %3, %5 : vector<8x256xf32>
    %c0_6 = arith.constant 0 : index
    %c0_7 = arith.constant 0 : index
    %c0_8 = arith.constant 0 : index
    %7 = vector.load %arg5[%c0_6, %c0_7, %c0_8] : memref<1x8x256xf32, #tpu.memory_space<vmem>>, vector<1x8x256xf32>
    %8 = vector.shape_cast %7 : vector<1x8x256xf32> to vector<8x256xf32>
    %9 = vector.shape_cast %6 : vector<8x256xf32> to vector<1x8x256xf32>
    tpu.vector_store %arg5[%c0_6, %c0_7, %c0_8], %9 {strides = array<i32>} : memref<1x8x256xf32, #tpu.memory_space<vmem>>, vector<1x8x256xf32>,
    return
  }
  func.func @transform_0(%arg0: i32, %arg1: i32) -> (i32, i32, i32) {
    %c0_i32 = arith.constant 0 : i32
    %c0_i32_0 = arith.constant 0 : i32
    return %arg0, %c0_i32, %arg1 : i32, i32, i32
  }
  func.func @transform_1(%arg0: i32, %arg1: i32) -> (i32, i32) {
    %c0_i32 = arith.constant 0 : i32
    %c0_i32_0 = arith.constant 0 : i32
    %c0_i32_1 = arith.constant 0 : i32
    return %c0_i32, %c0_i32_0 : i32, i32
  }
  func.func @transform_2(%arg0: i32, %arg1: i32) -> (i32, i32) {
    %c0_i32 = arith.constant 0 : i32
    %c0_i32_0 = arith.constant 0 : i32
    %c0_i32_1 = arith.constant 0 : i32
    return %c0_i32, %c0_i32_0 : i32, i32
  }
  func.func @transform_3(%arg0: i32, %arg1: i32) -> (i32, i32, i32) {
    %c0_i32 = arith.constant 0 : i32
    %c0_i32_0 = arith.constant 0 : i32
    return %arg0, %c0_i32, %arg1 : i32, i32, i32
  }
}

</mosaic_0001>

<bundles_post_ra>
// kernel: tpu_custom_call.1
= control target key start
LH: loop header
LB: loop body
LE: loop exit
PB: predicated region body
PF: predicated region fallthrough
CT: control target
= control target key end

     0   :  { %8 = vsyncpa [#allocation3], 0  ;;  %s683_s0 = inlined_call_operand.vmem [shape: f32[2,4,256], index: 0, kind: input, shape index: {}]   ;;  %s684_s1 = inlined_call_operand.vmem [shape: f32[8,4], index: 1, kind: input, shape index: {}]   ;;  %s685_s2 = inlined_call_operand.vmem [shape: f32[8,1], index: 2, kind: input, shape index: {}]   ;;  %s686_s3 = inlined_call_operand.hbm [shape: f32[2,8,256], index: 3, kind: output, shape index: {}]  }
   0x1   :  { %10 = vsyncpa [#allocation3 + $0x1], 0  ;;  %s565_s12 = smov 0   ;;  %s567_s13 = smov 0  }
   0x2   :  { %s569_s14 = smov 0   ;;  %s571_s15 = smov 0  }
   0x3   :  { %s573_s16 = smov 0   ;;  %s575_s17 = smov 0  }
   0x4 LB: > { %s385_s18 = sadd.s32 4294967295, %s540_s17   ;;  %s386_s19 = sadd.s32 4294967294, %s540_s17   ;;  %s540_s17 = sphi %s575_s17, %s16_s17   ;;  %s536_s16 = sphi %s573_s16, %s693_s16   ;;  %s532_s15 = sphi %s571_s15, %s692_s15   ;;  %s528_s14 = sphi %s569_s14, %s691_s14   ;;  %s524_s13 = sphi %s567_s13, %s690_s13   ;;  %s520_s12 = sphi %s565_s12, %s689_s12  }
   0x5   : > { %s28_s20 = sadd.s32 1, %s536_s16  ;;  %s107_s21 = sadd.s32 1, %s528_s14 }
   0x6   : > { %p30_p0 = scmp.ge.s32.totalorder %s28_s20, 2  ;;  %p117_p1 = scmp.ne.s32.totalorder %s528_s14, %s524_s13 }
   0x7   : > { %p118_p2 = scmp.eq.s32.totalorder %s385_s18, 1  ;;  %p123_p3 = scmp.ne.s32.totalorder %s524_s13, %s520_s12 }
   0x8   : > { %s695_s20 = smov (%p30_p0, %s28_s20), 0  ;;  %p124_p5 = scmp.eq.s32.totalorder %s386_s19, 1 }
   0x9   : > { %p605_p4 = por %p118_p2, %p117_p1  ;;  %s102_s23 = ssub.s32 %s536_s16, %s695_s20 }
   0xa   : > { %p389_p6 = scmp.ge.s32.totalorder %s540_s17, 1  ;;  %p105_p7 = scmp.eq.s32.totalorder %s102_s23, 0 }
   0xb   : > { %p612_p8 = por %p124_p5, %p123_p3  ;;  %p161_p9 = scmp.lt.s32.totalorder %s540_s17, 3 }
   0xc   : > { %s618_s25 = scalar_select %p105_p7, %s528_s14, %s107_s21  }
   0xd   : > { %p162_p10 = pnand %p389_p6, %p161_p9 }
   0xe   : > { %p190_p11 = scmp.lt.s32.totalorder (!%p162_p10), %s532_s15, 1  ;;  %v542_v0 = vmov (!%p162_p10), 0.0   ;;  %v543_v1 = vmov (!%p162_p10), 0   ;;  %v202_v2 = vld [vmem:[%s685_s2] sm:$0xff] (!%p162_p10)  ;;  %vm214_vm0 = vcmask (!%p162_p10), 1043456   ;;  %vm210_vm1 = vcmask (!%p162_p10), 31744  }
   0xf   : > { %165 = sbr.rel (%p162_p10) target bundleno = 260 (0x104), region = 32  ;;  %283 = vmatprep.mubr.f32.mxu0 (!%p162_p10), %v542_v0  ;;  %460 = vset.pattern.permute.xlu0 (!%p162_p10), %v543_v1  ;;  %v200_v5 = vld [vmem:[%s684_s1] sm:$0xff] (!%p162_p10)  ;;  %s186_s8 = sand.u32 (!%p162_p10), 1, %s524_s13  }
  0x10   : > { %205 = vperm.xlu0 (!%p162_p10), %460, %v202_v2   ;;  %s390_s9 = sshll.u32 (!%p162_p10), %s186_s8, 4  ;;  %s402_s10 = sshll.u32 (!%p162_p10), %s532_s15, 8 }
  0x11   : > { %s188_s11 = scalar_lea.vmem (!%p162_p10), [#allocation2], %s390_s9  ;;  %s636_s23 = scalar_lea.hbm (!%p162_p10), %s686_s3, %s402_s10 }
  0x12   : > { %s309_s18 = sshll.u32 (!%p162_p10), %s188_s11, 4  ;;  %s293_s26 = scalar_lea.sflag (!%p162_p10), [#allocation3], %s186_s8  ;;  %s638_s18 = int_to_ptr.vmem [resolvable:$true] %s309_s18 }
  0x13   : > { %s544_s27 = smov (!%p162_p10), [#allocation2]  }
  0x16   : > { %s191_s28 = scalar_select %p190_p11, %s532_s15, 1 }
  0x17   : > { %s462_s15 = scalar_lea.vmem %s638_s18, 256 }
  0x18   : > { %s401_s29 = sshll.u32 %s191_s28, 3  ;;  %p463_p12 = scmp.ne.s32.totalorder %s638_s18, %s462_s15 }
  0x19   : > { %s197_s5 = scalar_lea.vmem %s683_s0, %s401_s29  ;;  %s466_s28 = sshll.u32 %s544_s27, 4  ;;  %s467_s28 = int_to_ptr.vmem [resolvable:$false] %s466_s28 }
  0x1a   : > { %v201_v3 = vld [vmem:[%s197_s5] sm:$0xff]  ;;  %p464_p13 = pnand %p463_p12, %p605_p4  ;;  %s468_s29 = scalar_lea.vmem %s467_s28, 512 }
  0x1b   : > { %v209_v4 = vcombine.high %v201_v3, %v201_v3  ;;  %p469_p1 = scmp.lt.s32.totalorder %s638_s18, %s467_s28  ;;  %p470_p2 = scmp.lt.s32.totalorder %s468_s29, %s462_s15 }
  0x1c   : > { %p465_p0 = pneg %p464_p13 }
  0x1d   : > { %393 = vmatprep.subr.msk.mxu0 %vm214_vm0, %v209_v4  ;;  %p471_p3 = por %p470_p2, %p469_p1 }
  0x1e   : > { %394 = vmatpush1.msk.msra.mxu0 %vm214_vm0, %v201_v3 }
  0x1f   : > { %395 = vmatmul.mubr.msk.f32.vlgmr.msra.gmra.mrb[0].mxu0 %vm210_vm1, %v200_v5  ;;  %p472_p5 = pnand %p471_p3, %p465_p0 }
  0x8f   : > { %v206_v6 = vpop.permute.xlu0 %205 }
  0xf2   : > { %v285_v7 = vpop.f32.mrb[0].mxu0 }
  0xf3   : > { %v286_v8 = vadd.f32 %v285_v7, %v206_v6  ;;  %v287_v9 = vpop.f32.mrb[1].mxu0 }
  0xf4   : > { %v288_v10 = vadd.f32 %v287_v9, %v206_v6 }
  0xf5   : > { %290 = vst [vmem:[%s188_s11] sm:$0xff] %v286_v8 }
  0xf6   : > { %291 = vst [vmem:[%s188_s11 + $0x8] sm:$0xff] %v288_v10 }
  0xf7   : > { %475 = shalt.err (!%p472_p5)
}
  0xf8   : > { %s476_s30 = scalar_lea.hbm %s636_s23, 256  ;;  %s480_s6 = scalar_lea.hbm %s686_s3, 512 }
  0xf9   : > { %p477_p6 = scmp.ne.s32.totalorder %s636_s23, %s476_s30  ;;  %p481_p10 = scmp.lt.u32.totalorder %s636_s23, %s686_s3 }
  0xfa   : > { %p482_p11 = scmp.lt.u32.totalorder %s480_s6, %s476_s30  ;;  %p484_p13 = scmp.lt.u32.totalorder %s476_s30, %s636_s23 }
  0xfb   : > { %p478_p7 = pnand %p477_p6, %p605_p4 }
  0xfc   : > { %p483_p12 = por %p482_p11, %p481_p10 }
  0xfd   : > { %p479_p9 = pneg %p478_p7 }
  0xfe   : > { %p485_p0 = por %p484_p13, %p483_p12 }
 0x100   : > { %p486_p1 = pnand %p485_p0, %p479_p9 }
 0x102   : > { %489 = shalt.err (!%p486_p1)
}
 0x103   : > { %403 = dma.vmem_to_hbm [thread:$0]  (%p605_p4), %s638_s18, 256, %s636_s23, %s293_s26  }
 0x104 PF: > { %p409_p2 = scmp.ge.s32.totalorder %s540_s17, 2  ;;  %s321_s9 = sand.u32 1, %s520_s12  }
 0x105   : > { %s322_s10 = scalar_lea.sflag [#allocation3], %s321_s9 }
 0x106   : > { %p406_p3 = pnand %p409_p2, %p612_p8 }
 0x108   : > { %515 = dma.done.wait (!%p406_p3), %s322_s10, 256  }
 0x109   : > { %517 = vsyncadd (!%p406_p3), %s322_s10, 4294967040  ;;  %s16_s17 = sadd.s32 1, %s540_s17   ;;  %s689_s12 = smov %s524_s13 }
 0x10a   : > { %p13_p5 = scmp.ge.s32.totalorder %s16_s17, 4   ;;  %s690_s13 = smov %s528_s14 }
 0x10b   : > { %s691_s14 = smov %s618_s25  ;;  %s692_s15 = smov %s536_s16 }
 0x10c   : > { %s693_s16 = smov %s695_s20  ;;  %15 = sbr.rel (!%p13_p5) target bundleno = 4 (0x4), region = 67 }
 0x113   :  { %327 = vsyncpa [#allocation3], 1 }
 0x114   :  { %329 = vsyncpa [#allocation3 + $0x1], 1 }

</bundles_post_ra>
